<compile_context>
chip_gen: v5e
topology: v5e:2x2
jax: 0.10.0
libtpu: 0.0.40
codegen_flags: <defaults>
</compile_context>

<pallas_src>
import functools

import numpy as np
from numpy import tan, pi, arcsin, arctan, cos, sin

import jax
import jax.numpy as jnp
from jax import lax
from jax.experimental import pallas as pl
from jax.experimental.pallas import tpu as pltpu


# --------------------------------------------------------------------------
# Spherical kernel-sampling offsets (pure numpy, identical to the PyTorch ref)
# --------------------------------------------------------------------------
def get_xy(delta_phi, delta_theta):
    return np.array(
        [[(-tan(delta_theta), 1 / cos(delta_theta) * tan(delta_phi)),
          (0, tan(delta_phi)),
          (tan(delta_theta), 1 / cos(delta_theta) * tan(delta_phi))],
         [(-tan(delta_theta), 0), (1, 1), (tan(delta_theta), 0)],
         [(-tan(delta_theta), -1 / cos(delta_theta) * tan(delta_phi)),
          (0, -tan(delta_phi)),
          (tan(delta_theta), -1 / cos(delta_theta) * tan(delta_phi))]])


def cal_offset(h, w, img_r, img_c):
    phi = -((img_r + 0.5) / h * pi - pi / 2)
    theta = (img_c + 0.5) / w * 2 * pi - pi
    delta_phi = pi / h
    delta_theta = 2 * pi / w
    xys = get_xy(delta_phi, delta_theta)
    x = xys[..., 0]
    y = xys[..., 1]
    # errstate: silence divide warnings; the center entry is overwritten below
    # exactly as in the PyTorch reference.
    with np.errstate(divide="ignore", invalid="ignore"):
        rho = np.sqrt(x ** 2 + y ** 2)
        v = arctan(rho)
        new_phi = arcsin(cos(v) * sin(phi) + y * sin(v) * cos(phi) / rho)
        new_theta = theta + arctan(
            x * sin(v) / (rho * cos(phi) * cos(v) - y * sin(phi) * sin(v)))
    new_r = (-new_phi + pi / 2) * h / pi - 0.5
    new_c = (new_theta + pi) * w / 2 / pi - 0.5
    new_c = (new_c + w) % w
    new_result = np.stack([new_r, new_c], axis=-1)
    new_result[1, 1] = (img_r, img_c)
    for i in range(3):
        for j in range(3):
            new_result[i, j, 0] = new_result[i, j, 0] - (img_r + i - 1)
            new_result[i, j, 1] = new_result[i, j, 1] - (img_c + j - 1)
    return new_result.reshape(-1)


def offsets_map(h, w):
    co = np.array([[cal_offset(h, w, i, j) for j in range(0, w)]
                   for i in range(0, h)])
    return co.transpose(2, 0, 1)  # (2*kh*kw, h, w)


# --------------------------------------------------------------------------
# Glue: im2col for the standard conv and the deformable (bilinear) conv.
# --------------------------------------------------------------------------
def _out_size(H, W, ksize, stride, padding, dilation):
    kh, kw = ksize
    sh, sw = stride
    ph, pw = padding
    dh, dw = dilation
    out_h = (H + 2 * ph - dh * (kh - 1) - 1) // sh + 1
    out_w = (W + 2 * pw - dw * (kw - 1) - 1) // sw + 1
    return out_h, out_w


def im2col_standard(x, ksize, stride, padding, dilation):
    B, C, H, W = x.shape
    kh, kw = ksize
    sh, sw = stride
    ph, pw = padding
    dh, dw = dilation
    out_h, out_w = _out_size(H, W, ksize, stride, padding, dilation)
    xp = jnp.pad(x, ((0, 0), (0, 0), (ph, ph), (pw, pw)))
    patches = []
    for ki in range(kh):
        for kj in range(kw):
            ys, xs = ki * dh, kj * dw
            patches.append(xp[:, :,
                              ys:ys + sh * (out_h - 1) + 1:sh,
                              xs:xs + sw * (out_w - 1) + 1:sw])
    cols = jnp.stack(patches, axis=2)                 # (B, C, kh*kw, oh, ow)
    cols = cols.transpose(0, 3, 4, 1, 2).reshape(B * out_h * out_w,
                                                 C * kh * kw)
    return cols, out_h, out_w


def im2col_deform(x, offsets, ksize, stride, padding, dilation):
    """Deformable im2col: 4 batched gathers (one per bilinear corner)."""
    B, C, H, W = x.shape
    kh, kw = ksize
    sh, sw = stride
    ph, pw = padding
    dh, dw = dilation
    out_h, out_w = _out_size(H, W, ksize, stride, padding, dilation)

    base_y = (jnp.arange(out_h, dtype=jnp.float32) * sh - ph)[None, :, None]
    base_x = (jnp.arange(out_w, dtype=jnp.float32) * sw - pw)[None, None, :]
    tap_dy = (jnp.repeat(jnp.arange(kh), kw) * dh
              ).astype(jnp.float32)[:, None, None]            # (K9,1,1)
    tap_dx = (jnp.tile(jnp.arange(kw), kh) * dw
              ).astype(jnp.float32)[:, None, None]             # (K9,1,1)
    off = offsets.astype(jnp.float32)
    py = base_y + tap_dy + off[0::2]                           # (K9, oh, ow)
    px = base_x + tap_dx + off[1::2]

    y0 = jnp.floor(py)
    x0 = jnp.floor(px)
    ly = py - y0
    lx = px - x0
    hy = 1.0 - ly
    hx = 1.0 - lx

    def corner(yi, xi):
        valid = (yi >= 0) & (yi <= H - 1) & (xi >= 0) & (xi <= W - 1)
        yc = jnp.clip(yi, 0, H - 1).astype(jnp.int32)
        xc = jnp.clip(xi, 0, W - 1).astype(jnp.int32)
        v = x[:, :, yc, xc]                        # (B, C, K9, oh, ow)
        return v * valid.astype(x.dtype)

    w00 = (hy * hx).astype(x.dtype)
    w01 = (hy * lx).astype(x.dtype)
    w10 = (ly * hx).astype(x.dtype)
    w11 = (ly * lx).astype(x.dtype)
    vals = (corner(y0, x0) * w00
            + corner(y0, x0 + 1.0) * w01
            + corner(y0 + 1.0, x0) * w10
            + corner(y0 + 1.0, x0 + 1.0) * w11)    # (B, C, K9, oh, ow)
    cols = vals.transpose(0, 3, 4, 1, 2).reshape(B * out_h * out_w,
                                                 C * kh * kw)
    return cols, out_h, out_w


# --------------------------------------------------------------------------
# Pallas kernels:  out = cols @ Wc + b_eff  (LoRA already folded into Wc).
# --------------------------------------------------------------------------
def _sphere_lora_kernel_resident(cols_ref, w_ref, b_ref, out_ref):
    acc = jnp.dot(cols_ref[...], w_ref[...],
                  preferred_element_type=jnp.float32)
    out_ref[...] = (acc + b_ref[...]).astype(out_ref.dtype)


def _sphere_lora_kernel_kblocked(cols_ref, w_ref, b_ref, out_ref, acc_ref):
    k = pl.program_id(1)

    @pl.when(k == 0)
    def _():
        acc_ref[...] = jnp.zeros_like(acc_ref)

    acc_ref[...] += jnp.dot(cols_ref[...], w_ref[...],
                            preferred_element_type=jnp.float32)

    @pl.when(k == pl.num_programs(1) - 1)
    def _():
        out_ref[...] = (acc_ref[...] + b_ref[...]).astype(out_ref.dtype)


def _round_up(x, m):
    return ((x + m - 1) // m) * m


def _vmem_capacity_bytes():
    try:
        return int(pltpu.get_tpu_info().vmem_capacity_bytes)
    except Exception:
        return 64 * 1024 * 1024          # conservative default (v7x)


def _choose_tm(M, tm_max=512):
    if M <= 128:
        return M                          # full extent is always legal
    tm = max(128, min(tm_max, (M // 128) * 128))
    # target >=4 grid steps along M (2 per TensorCore on v7x) when M allows
    while tm > 128 and -(-M // tm) < 4:
        tm -= 128
    return tm


def sphere_lora_forward(x, weight, bias, wd, wu, scale, offsets,
                        stride=(1, 1), padding=(1, 1), dilation=(1, 1),
                        tm_max=512):
    orig_dtype = x.dtype
    B, C, H, W = x.shape
    O, _, kh, kw = weight.shape
    R = wd.shape[0]

    # ---- im2col in bf16 (halves glue traffic) ------------------------------
    xb = x.astype(jnp.bfloat16)
    cols_std, out_h, out_w = im2col_standard(xb, (kh, kw), stride, padding,
                                             dilation)
    cols_def, _, _ = im2col_deform(xb, offsets, (kh, kw), stride, padding,
                                   dilation)

    M = B * out_h * out_w
    K = C * kh * kw
    K2 = 2 * K
    O_pad = _round_up(O, 128)

    # ---- fold the LoRA branch into one effective weight (tiny GEMMs) -------
    W_mat = weight.reshape(O, K).T.astype(jnp.float32)        # (K, O)
    b_row = bias.reshape(1, O).astype(jnp.float32)            # (1, O)
    Wd_mat = wd.reshape(R, 2 * O).astype(jnp.float32)         # (R, 2O)
    Wd_dx = Wd_mat[:, :O].T                                   # (O, R) acts on dx
    Wd_h = Wd_mat[:, O:].T                                    # (O, R) acts on h
    Wu_t = wu.reshape(O, R).T.astype(jnp.float32)             # (R, O)
    s = jnp.asarray(scale, jnp.float32)
    lora_h = s * (Wd_h @ Wu_t)                                # (O, O)
    lora_dx = s * (Wd_dx @ Wu_t)                              # (O, O)
    W1 = W_mat + W_mat @ lora_h                               # (K, O) for cols_std
    W2 = W_mat @ lora_dx                                      # (K, O) for cols_def
    b_eff = b_row + b_row @ (lora_dx + lora_h)                # (1, O)
    Wc = jnp.concatenate([W1, W2], axis=0)                    # (2K, O)

    # ---- per-generation VMEM budget & tiling plan ---------------------------
    budget = _vmem_capacity_bytes() * 3 // 4        # ~48 MiB v7x, ~96 MiB v5e/v6e
    weight_budget = min(budget // 4, 16 * 1024 * 1024)

    K2_p128 = _round_up(K2, 128)
    full_weight_bytes = K2_p128 * O_pad * 2                   # bf16, 1 buffer
    use_k_grid = full_weight_bytes > weight_budget
    if use_k_grid:
        tk = max(128, (weight_budget // (2 * O_pad * 2) // 128) * 128)
        tk = min(tk, K2_p128)
        K2_pad = _round_up(K2, tk)
    else:
        tk = None
        K2_pad = K2_p128

    tm = _choose_tm(M, tm_max)

    def step_bytes(t):
        b = 2 * t * K2_pad * 2             # streamed cols tile, double-buffered bf16
        b += 2 * t * O_pad * 2             # output tile, double-buffered bf16
        b += O_pad * 4                     # bias row (single buffer)
        if use_k_grid:
            b += 2 * tk * O_pad * 2        # double-buffered weight blocks
            b += t * O_pad * 4             # f32 accumulator scratch
        else:
            b += K2_pad * O_pad * 2        # resident weights, single buffer
        return b

    while tm > 128 and step_bytes(tm) > budget:
        tm -= 128
    vmem_limit = int(min(max(step_bytes(tm) + (4 << 20), 32 << 20), budget))

    # ---- single concatenated streamed operand, padded once along K ----------
    cols = jnp.concatenate([cols_std, cols_def], axis=1)      # (M, 2K) bf16
    if K2_pad != K2:
        cols = jnp.pad(cols, ((0, 0), (0, K2_pad - K2)))
    Wc = jnp.pad(Wc, ((0, K2_pad - K2), (0, O_pad - O))).astype(jnp.bfloat16)
    b_eff = jnp.pad(b_eff, ((0, 0), (0, O_pad - O)))          # stays f32

    grid_m = pl.cdiv(M, tm)                # no M pad: grid overruns, OOB rows
                                           # are never written back nor reduced

    if not use_k_grid:
        out = pl.pallas_call(
            _sphere_lora_kernel_resident,
            out_shape=jax.ShapeDtypeStruct((M, O_pad), jnp.bfloat16),
            grid_spec=pltpu.PrefetchScalarGridSpec(
                num_scalar_prefetch=0,
                grid=(grid_m,),
                in_specs=[
                    pl.BlockSpec((tm, K2_pad), lambda i: (i, 0)),
                    pl.BlockSpec((K2_pad, O_pad), lambda i: (0, 0),
                                 pipeline_mode=pl.Buffered(1)),
                    pl.BlockSpec((1, O_pad), lambda i: (0, 0),
                                 pipeline_mode=pl.Buffered(1)),
                ],
                out_specs=pl.BlockSpec((tm, O_pad), lambda i: (i, 0)),
            ),
            compiler_params=pltpu.CompilerParams(
                dimension_semantics=("parallel",),
                vmem_limit_bytes=vmem_limit),
        )(cols, Wc, b_eff)
    else:
        out = pl.pallas_call(
            _sphere_lora_kernel_kblocked,
            out_shape=jax.ShapeDtypeStruct((M, O_pad), jnp.bfloat16),
            grid_spec=pltpu.PrefetchScalarGridSpec(
                num_scalar_prefetch=0,
                grid=(grid_m, K2_pad // tk),
                in_specs=[
                    pl.BlockSpec((tm, tk), lambda i, k: (i, k)),
                    pl.BlockSpec((tk, O_pad), lambda i, k: (k, 0)),
                    pl.BlockSpec((1, O_pad), lambda i, k: (0, 0),
                                 pipeline_mode=pl.Buffered(1)),
                ],
                out_specs=pl.BlockSpec((tm, O_pad), lambda i, k: (i, 0)),
                scratch_shapes=[pltpu.VMEM((tm, O_pad), jnp.float32)],
            ),
            compiler_params=pltpu.CompilerParams(
                dimension_semantics=("parallel", "arbitrary"),
                vmem_limit_bytes=vmem_limit),
        )(cols, Wc, b_eff)

    out = out[:, :O].reshape(B, out_h, out_w, O).transpose(0, 3, 1, 2)  # NCHW
    return out.astype(orig_dtype)


# --------------------------------------------------------------------------
if __name__ == "__main__":
    key = jax.random.PRNGKey(0)
    k1, k2, k3, k4, k5 = jax.random.split(key, 5)

    # Small shapes consistent with the module.
    bs, in_dim, H, W = 2, 4, 16, 16
    out_dim = 8
    low_factor = 2
    R = max(out_dim // low_factor, 1)
    kh = kw = 3
    stride, padding, dilation = (1, 1), (1, 1), (1, 1)
    out_h, out_w = _out_size(H, W, (kh, kw), stride, padding, dilation)

    x = jax.random.normal(k1, (bs, in_dim, H, W), jnp.float32)
    weight = jax.random.normal(k2, (out_dim, in_dim, kh, kw), jnp.float32) * 0.1
    bias = jax.random.normal(k3, (out_dim,), jnp.float32) * 0.1
    fan_in = 2 * out_dim
    bound = 1.0 / np.sqrt(fan_in)
    wd = jax.random.uniform(k4, (R, 2 * out_dim, 1, 1), jnp.float32,
                            -bound, bound)          # conv_down weight
    # NOTE: the PyTorch __init__ zero-inits conv_up (LoRA branch = 0); we use a
    # small deterministic random init so the fused LoRA path is exercised.
    wu = jax.random.normal(k5, (out_dim, R, 1, 1), jnp.float32) * 0.05
    scale = jnp.float32(1.0)

    offsets = jnp.asarray(offsets_map(out_h, out_w), jnp.float32)  # (18,oh,ow)

    fwd = jax.jit(functools.partial(sphere_lora_forward,
                                    stride=stride, padding=padding,
                                    dilation=dilation))
    out = fwd(x, weight, bias, wd, wu, scale, offsets)
    out = jax.block_until_ready(out)

    # ------------------ pure-JAX f32 reference check ------------------
    h_ref = lax.conv_general_dilated(
        x, weight, window_strides=stride,
        padding=[(padding[0], padding[0]), (padding[1], padding[1])],
        rhs_dilation=dilation,
        dimension_numbers=("NCHW", "OIHW", "NCHW")) + bias[None, :, None, None]
    cols_def_ref, _, _ = im2col_deform(x, offsets, (kh, kw), stride, padding,
                                       dilation)
    dx_ref = (cols_def_ref @ weight.reshape(out_dim, -1).T + bias[None, :])
    dx_ref = dx_ref.reshape(bs, out_h, out_w, out_dim).transpose(0, 3, 1, 2)
    dxh = jnp.concatenate([dx_ref, h_ref], axis=1)
    down = jnp.einsum("rc,bchw->brhw", wd.reshape(R, 2 * out_dim), dxh)
    up = jnp.einsum("or,brhw->bohw", wu.reshape(out_dim, R), down)
    ref = h_ref + scale * up

    assert out.shape == ref.shape == (bs, out_dim, out_h, out_w)
    # bf16 streamed inputs / folded weights / output with f32 accumulation
    # -> looser tolerance than a pure-f32 path.
    np.testing.assert_allclose(np.asarray(out), np.asarray(ref),
                               rtol=3e-2, atol=4e-2)
    print("KERNEL_OK")
</pallas_src>

<mosaic_0001>
module attributes {stable_mosaic.version = 11 : i64} {
  func.func @_sphere_lora_kernel_resident(%arg0: i32, %arg1: memref<128x128xbf16, #tpu.memory_space<vmem>>, %arg2: memref<128x128xbf16, #tpu.memory_space<vmem>>, %arg3: memref<1x128xf32, #tpu.memory_space<vmem>>, %arg4: memref<128x128xbf16, #tpu.memory_space<vmem>>) attributes {dimension_semantics = [#tpu.dimension_semantics<parallel>], iteration_bounds = array<i64: 4>, scalar_prefetch = 0 : i64, scratch_operands = 0 : i64, tpu.core_type = #tpu.core_type<tc>, window_params = [{transform_indices = @transform_0, window_bounds = array<i64: 128, 128>}, {pipeline_mode = #tpu.pipeline_mode<synchronous>, transform_indices = @transform_1, window_bounds = array<i64: 128, 128>}, {pipeline_mode = #tpu.pipeline_mode<synchronous>, transform_indices = @transform_2, window_bounds = array<i64: 1, 128>}, {transform_indices = @transform_3, window_bounds = array<i64: 128, 128>}]} {
    %c0 = arith.constant 0 : index
    %c0_0 = arith.constant 0 : index
    %0 = vector.load %arg1[%c0, %c0_0] : memref<128x128xbf16, #tpu.memory_space<vmem>>, vector<128x128xbf16>
    %c0_1 = arith.constant 0 : index
    %c0_2 = arith.constant 0 : index
    %1 = vector.load %arg2[%c0_1, %c0_2] : memref<128x128xbf16, #tpu.memory_space<vmem>>, vector<128x128xbf16>
    %cst = arith.constant dense<0.000000e+00> : vector<128x128xf32>
    %2 = tpu.matmul %0, %1, %cst {dimension_numbers = #tpu.dot_dimension_numbers<[1], [0], [0], [1], [0, 0, 1, 1], [], []>} : vector<128x128xbf16>, vector<128x128xbf16>, vector<128x128xf32> -> vector<128x128xf32>
    %c0_3 = arith.constant 0 : index
    %c0_4 = arith.constant 0 : index
    %3 = vector.load %arg3[%c0_3, %c0_4] : memref<1x128xf32, #tpu.memory_space<vmem>>, vector<1x128xf32>
    %4 = vector.broadcast %3 : vector<1x128xf32> to vector<128x128xf32>
    %5 = arith.addf %2, %4 : vector<128x128xf32>
    %6 = arith.truncf %5 : vector<128x128xf32> to vector<128x128xbf16>
    %c0_5 = arith.constant 0 : index
    %c0_6 = arith.constant 0 : index
    %7 = vector.load %arg4[%c0_5, %c0_6] : memref<128x128xbf16, #tpu.memory_space<vmem>>, vector<128x128xbf16>
    tpu.vector_store %arg4[%c0_5, %c0_6], %6 {strides = array<i32>} : memref<128x128xbf16, #tpu.memory_space<vmem>>, vector<128x128xbf16>,
    return
  }
  func.func @transform_0(%arg0: i32) -> (i32, i32) {
    %c0_i32 = arith.constant 0 : i32
    %c0_i32_0 = arith.constant 0 : i32
    return %arg0, %c0_i32 : i32, i32
  }
  func.func @transform_1(%arg0: i32) -> (i32, i32) {
    %c0_i32 = arith.constant 0 : i32
    %c0_i32_0 = arith.constant 0 : i32
    %c0_i32_1 = arith.constant 0 : i32
    return %c0_i32, %c0_i32_0 : i32, i32
  }
  func.func @transform_2(%arg0: i32) -> (i32, i32) {
    %c0_i32 = arith.constant 0 : i32
    %c0_i32_0 = arith.constant 0 : i32
    %c0_i32_1 = arith.constant 0 : i32
    return %c0_i32, %c0_i32_0 : i32, i32
  }
  func.func @transform_3(%arg0: i32) -> (i32, i32) {
    %c0_i32 = arith.constant 0 : i32
    %c0_i32_0 = arith.constant 0 : i32
    return %arg0, %c0_i32 : i32, i32
  }
}

</mosaic_0001>

<bundles_post_ra>
// kernel: sphere_lora_forward.1
= control target key start
LH: loop header
LB: loop body
LE: loop exit
PB: predicated region body
PF: predicated region fallthrough
CT: control target
= control target key end

     0   :  { %s642_s12 = smov 0   ;;  %s703_s0 = inlined_call_operand.vmem [shape: bf16[512,128], index: 0, kind: input, shape index: {}]   ;;  %s704_s1 = inlined_call_operand.vmem [shape: bf16[128,128], index: 1, kind: input, shape index: {}]   ;;  %s705_s2 = inlined_call_operand.vmem [shape: f32[1,128], index: 2, kind: input, shape index: {}]   ;;  %s706_s3 = inlined_call_operand.vmem [shape: bf16[512,128], index: 3, kind: output, shape index: {}]  }
   0x1 LB: > { %s443_s13 = sadd.s32 4294967295, %s620_s12   ;;  %p447_p0 = scmp.ge.s32.totalorder %s620_s12, 1  ;;  %s620_s12 = sphi %s642_s12, %s13_s12  }
   0x2   : > { %p138_p1 = scmp.lt.s32.totalorder %s620_s12, 5 }
   0x4   : > { %p139_p2 = pnand %p447_p0, %p138_p1 }
   0x5   : > { %s448_s22 = sshll.u32 (!%p139_p2), %s443_s13, 4 }
   0x6   : > { %142 = sbr.rel (%p139_p2) target bundleno = 206 (0xce), region = 32  ;;  %p163_p3 = scmp.lt.s32.totalorder (!%p139_p2), %s448_s22, 63 }
   0xb   : > { %v533_v0 = vld [vmem:[%s704_s1 + $0x38] sm:$0xff]  ;;  %v532_v1 = vld [vmem:[%s704_s1 + $0x30] sm:$0xff]  ;;  %v531_v2 = vld [vmem:[%s704_s1 + $0x28] sm:$0xff]  ;;  %s708_s22 = smov (!%p163_p3, %s448_s22), 63 }
   0xc   : > { %306 = vmatpush.bf16.msra.mxu0 %v533_v0  ;;  %581 = vmatpush.bf16.msra.mxu1 %v533_v0  ;;  %v530_v3 = vld [vmem:[%s704_s1 + $0x20] sm:$0xff]  ;;  %v529_v4 = vld [vmem:[%s704_s1 + $0x18] sm:$0xff]  ;;  %v528_v5 = vld [vmem:[%s704_s1 + $0x10] sm:$0xff]  ;;  %s449_s29 = sshll.u32 %s708_s22, 2 }
   0xd   : > { %582 = vmatpush.bf16.msra.mxu2 %v533_v0  ;;  %583 = vmatpush.bf16.msra.mxu3 %v533_v0  ;;  %v527_v6 = vld [vmem:[%s704_s1 + $0x8] sm:$0xff]  ;;  %v526_v7 = vld [vmem:[%s704_s1] sm:$0xff]  ;;  %s166_s7 = scalar_lea.vmem %s703_s0, %s449_s29  ;;  %s690_s13 = scalar_lea.vmem %s706_s3, %s449_s29 }
   0xe   : > { %v518_v8 = vld [vmem:[%s166_s7] sm:$0xff]  ;;  %v520_v9 = vld [vmem:[%s166_s7 + $0x10] sm:$0xff]  ;;  %v519_v12 = vld [vmem:[%s166_s7 + $0x8] sm:$0xff] }
   0xf   : > { %v522_v10 = vld [vmem:[%s166_s7 + $0x20] sm:$0xff]  ;;  %v524_v11 = vld [vmem:[%s166_s7 + $0x30] sm:$0xff]  ;;  %v521_v13 = vld [vmem:[%s166_s7 + $0x18] sm:$0xff] }
  0x10   : > { %307 = vmatpush.bf16.msra.mxu0 %v532_v1  ;;  %584 = vmatpush.bf16.msra.mxu1 %v532_v1  ;;  %v523_v14 = vld [vmem:[%s166_s7 + $0x28] sm:$0xff]  ;;  %v525_v15 = vld [vmem:[%s166_s7 + $0x38] sm:$0xff]  ;;  %v613_v18 = vld [vmem:[%s705_s2] ss:$0 sm:$0xff] }
  0x11   : > { %585 = vmatpush.bf16.msra.mxu2 %v532_v1  ;;  %586 = vmatpush.bf16.msra.mxu3 %v532_v1 }
  0x14   : > { %308 = vmatpush.bf16.msra.mxu0 %v531_v2  ;;  %587 = vmatpush.bf16.msra.mxu1 %v531_v2 }
  0x15   : > { %588 = vmatpush.bf16.msra.mxu2 %v531_v2  ;;  %589 = vmatpush.bf16.msra.mxu3 %v531_v2 }
  0x18   : > { %309 = vmatpush.bf16.msra.mxu0 %v530_v3  ;;  %590 = vmatpush.bf16.msra.mxu1 %v530_v3 }
  0x19   : > { %591 = vmatpush.bf16.msra.mxu2 %v530_v3  ;;  %592 = vmatpush.bf16.msra.mxu3 %v530_v3 }
  0x1c   : > { %310 = vmatpush.bf16.msra.mxu0 %v529_v4  ;;  %593 = vmatpush.bf16.msra.mxu1 %v529_v4 }
  0x1d   : > { %594 = vmatpush.bf16.msra.mxu2 %v529_v4  ;;  %595 = vmatpush.bf16.msra.mxu3 %v529_v4 }
  0x20   : > { %311 = vmatpush.bf16.msra.mxu0 %v528_v5  ;;  %596 = vmatpush.bf16.msra.mxu1 %v528_v5 }
  0x21   : > { %597 = vmatpush.bf16.msra.mxu2 %v528_v5  ;;  %598 = vmatpush.bf16.msra.mxu3 %v528_v5 }
  0x24   : > { %312 = vmatpush.bf16.msra.mxu0 %v527_v6  ;;  %599 = vmatpush.bf16.msra.mxu1 %v527_v6 }
  0x25   : > { %600 = vmatpush.bf16.msra.mxu2 %v527_v6  ;;  %601 = vmatpush.bf16.msra.mxu3 %v527_v6 }
  0x28   : > { %313 = vmatpush.bf16.msra.mxu0 %v526_v7  ;;  %602 = vmatpush.bf16.msra.mxu1 %v526_v7 }
  0x29   : > { %603 = vmatpush.bf16.msra.mxu2 %v526_v7  ;;  %604 = vmatpush.bf16.msra.mxu3 %v526_v7 }
  0x2b   : > { %314 = vmatmul.bf16.vlgmr.msra.gmra.mxu0 %v518_v8  ;;  %324 = vmatmul.bf16.vlgmr.msra.gmra.mxu1 %v520_v9 }
  0x2c   : > { %334 = vmatmul.bf16.vlgmr.msra.gmra.mxu2 %v522_v10  ;;  %344 = vmatmul.bf16.vlgmr.msra.gmra.mxu3 %v524_v11 }
  0x3b   : > { %319 = vmatmul.bf16.gmra.mxu0 %v519_v12  ;;  %329 = vmatmul.bf16.gmra.mxu1 %v521_v13 }
  0x3c   : > { %339 = vmatmul.bf16.gmra.mxu2 %v523_v14  ;;  %349 = vmatmul.bf16.gmra.mxu3 %v525_v15 }
  0xa8   : > { %v315_v16 = vpop.f32.mrf.mxu0  ;;  %v325_v17 = vpop.f32.mrf.mxu1 }
  0xa9   : > { %v316_v23 = vadd.f32 %v613_v18, %v315_v16  ;;  %v326_v24 = vadd.f32 %v613_v18, %v325_v17 }
  0xaf   : > { %v335_v19 = vpop.f32.mrf.mxu2  ;;  %v345_v20 = vpop.f32.mrf.mxu3 }
  0xb0   : > { %v317_v21 = vpop.f32.mrf.mxu0  ;;  %v327_v22 = vpop.f32.mrf.mxu1  ;;  %v336_v31 = vadd.f32 %v613_v18, %v335_v19  ;;  %v346_v32 = vadd.f32 %v613_v18, %v345_v20 }
  0xb1   : > { %v318_v25 = vadd.f32 %v613_v18, %v317_v21  ;;  %v328_v26 = vadd.f32 %v613_v18, %v327_v22 }
  0xb3   : > { %v537_v27 = vpack.c.bf16 %v318_v25, %v316_v23  ;;  %v547_v28 = vpack.c.bf16 %v328_v26, %v326_v24 }
  0xb5   : > { %538 = vst [vmem:[%s690_s13] sm:$0xff] %v537_v27  }
  0xb6   : > { %575 = vst [vmem:[%s690_s13 + $0x10] sm:$0xff] %v547_v28  }
  0xb7   : > { %v337_v29 = vpop.f32.mrf.mxu2  ;;  %v347_v30 = vpop.f32.mrf.mxu3 }
  0xb8   : > { %v338_v33 = vadd.f32 %v613_v18, %v337_v29  ;;  %v348_v34 = vadd.f32 %v613_v18, %v347_v30  ;;  %v320_v35 = vpop.f32.mrf.mxu0  ;;  %v330_v36 = vpop.f32.mrf.mxu1 }
  0xb9   : > { %v321_v43 = vadd.f32 %v613_v18, %v320_v35  ;;  %v331_v44 = vadd.f32 %v613_v18, %v330_v36 }
  0xba   : > { %v557_v37 = vpack.c.bf16 %v338_v33, %v336_v31  ;;  %v567_v38 = vpack.c.bf16 %v348_v34, %v346_v32 }
  0xbc   : > { %577 = vst [vmem:[%s690_s13 + $0x20] sm:$0xff] %v557_v37  }
  0xbd   : > { %579 = vst [vmem:[%s690_s13 + $0x30] sm:$0xff] %v567_v38  }
  0xbf   : > { %v340_v39 = vpop.f32.mrf.mxu2  ;;  %v350_v40 = vpop.f32.mrf.mxu3 }
  0xc0   : > { %v322_v41 = vpop.f32.mrf.mxu0  ;;  %v332_v42 = vpop.f32.mrf.mxu1  ;;  %v341_v51 = vadd.f32 %v613_v18, %v340_v39  ;;  %v351_v52 = vadd.f32 %v613_v18, %v350_v40 }
  0xc1   : > { %v323_v45 = vadd.f32 %v613_v18, %v322_v41  ;;  %v333_v46 = vadd.f32 %v613_v18, %v332_v42 }
  0xc3   : > { %v542_v47 = vpack.c.bf16 %v323_v45, %v321_v43  ;;  %v552_v48 = vpack.c.bf16 %v333_v46, %v331_v44 }
  0xc5   : > { %574 = vst [vmem:[%s690_s13 + $0x8] sm:$0xff] %v542_v47  }
  0xc6   : > { %576 = vst [vmem:[%s690_s13 + $0x18] sm:$0xff] %v552_v48  }
  0xc7   : > { %v342_v49 = vpop.f32.mrf.mxu2  ;;  %v352_v50 = vpop.f32.mrf.mxu3 }
  0xc8   : > { %v343_v53 = vadd.f32 %v613_v18, %v342_v49  ;;  %v353_v54 = vadd.f32 %v613_v18, %v352_v50 }
  0xca   : > { %v562_v55 = vpack.c.bf16 %v343_v53, %v341_v51  ;;  %v572_v56 = vpack.c.bf16 %v353_v54, %v351_v52 }
  0xcc   : > { %578 = vst [vmem:[%s690_s13 + $0x28] sm:$0xff] %v562_v55  }
  0xcd   : > { %580 = vst [vmem:[%s690_s13 + $0x38] sm:$0xff] %v572_v56  }
  0xce PF: > { %s13_s12 = sadd.s32 1, %s620_s12  }
  0xcf   : > { %p10_p4 = scmp.ge.s32.totalorder %s13_s12, 6  }
  0xd1   :  { %12 = sbr.rel (!%p10_p4) target bundleno = 1 (0x1), region = 62 }

</bundles_post_ra>
